<compile_context>
chip_gen: v7x
topology: tpu7x:2x2x1
jax: 0.10.0
libtpu: 0.0.40
codegen_flags: <defaults>
</compile_context>

<pallas_src>
import functools

import jax
import jax.numpy as jnp
from jax.experimental import pallas as pl
from jax.experimental.pallas import tpu as pltpu


def _round_up(n, m):
    return (n + m - 1) // m * m


def _cdiv(a, b):
    return -(-a // b)


def _vmem_capacity_bytes():
    try:
        cap = getattr(pltpu.get_tpu_info(), "vmem_capacity_bytes", None)
        if cap:
            return int(cap)
    except Exception:
        pass
    return 128 * 2**20  # v5e / v6e physical VMEM fallback


def _resnet_block_kernel(x_ref, w0_ref, b0_ref, w1_ref, b1_ref, *rest,
                         use_shortcut, compute_dtype):
    if use_shortcut:
        ws_ref, o_ref = rest
    else:
        (o_ref,) = rest
        ws_ref = None

    # x arrives already in the compute/stream dtype (f32 or bf16), so there is
    # no per-step VPU cast of the activation tile.
    x = x_ref[...]

    # net = fc_0(relu(x)); f32 accumulation on the MXU, f32 bias add.
    h = jnp.maximum(x, 0.0)
    net = jnp.dot(h, w0_ref[...], preferred_element_type=jnp.float32) + b0_ref[...]

    # dx = fc_1(relu(net))
    g = jnp.maximum(net, 0.0)
    if compute_dtype is not None:
        g = g.astype(compute_dtype)
    dx = jnp.dot(g, w1_ref[...], preferred_element_type=jnp.float32) + b1_ref[...]

    # x_s = shortcut(x) (bias-free Linear) or identity
    if use_shortcut:
        x_s = jnp.dot(x, ws_ref[...], preferred_element_type=jnp.float32)
    else:
        x_s = x

    o_ref[...] = (x_s + dx).astype(o_ref.dtype)


def prepare_resnet_block_fc_params(params, *, compute_dtype=None):
    """One-time parameter prep: pad feature dims to multiples of 128 and cast
    weights to the compute dtype, so repeated forwards skip this HBM traffic.

    params: dict with w0 (size_in,size_h), b0 (size_h,), w1 (size_h,size_out),
            b1 (size_out,), optionally ws (size_in,size_out).
    """
    w0 = jnp.asarray(params["w0"], jnp.float32)
    b0 = jnp.asarray(params["b0"], jnp.float32)
    w1 = jnp.asarray(params["w1"], jnp.float32)
    b1 = jnp.asarray(params["b1"], jnp.float32)
    size_in, size_h = w0.shape
    size_out = w1.shape[1]
    use_shortcut = "ws" in params

    fi = _round_up(size_in, 128)
    fh = _round_up(size_h, 128)
    fo = _round_up(size_out, 128)

    cd = None if compute_dtype is None else jnp.dtype(compute_dtype)
    w_dtype = jnp.float32 if cd is None else cd

    prepared = {
        "_prepared": True,
        "w0": jnp.pad(w0, ((0, fi - size_in), (0, fh - size_h))).astype(w_dtype),
        "b0": jnp.pad(b0.reshape(1, -1), ((0, 0), (0, fh - size_h))),
        "w1": jnp.pad(w1, ((0, fh - size_h), (0, fo - size_out))).astype(w_dtype),
        "b1": jnp.pad(b1.reshape(1, -1), ((0, 0), (0, fo - size_out))),
        "sizes": (size_in, size_h, size_out, fi, fh, fo),
        "compute_dtype": cd,
        "use_shortcut": use_shortcut,
    }
    if use_shortcut:
        ws = jnp.asarray(params["ws"], jnp.float32)
        prepared["ws"] = jnp.pad(
            ws, ((0, fi - size_in), (0, fo - size_out))).astype(w_dtype)
    return prepared


# Tri-state capability flag for pipeline_mode=pl.Buffered(1) on resident
# (constant-index) weight BlockSpecs: None = unknown, then True/False.
_SINGLE_BUFFER_OK = None


def resnet_block_fc(x, params, *, block_rows=None, compute_dtype=None,
                    out_dtype=None):
    """Apply the ResnetBlockFC forward pass with a single fused Pallas kernel.

    x: (..., size_in) array.
    params: raw param dict (see prepare_resnet_block_fc_params) or an already
            prepared dict (recommended for repeated calls).
    block_rows: target row tile; default 1024 for small feature dims
            (fi+fo <= 512 lanes), else 256.  M is split evenly into tiles.
    compute_dtype: None (f32 matmuls) or jnp.bfloat16 (bf16 matmuls with f32
            accumulation; weights and the x stream are shipped in bf16, which
            also makes the identity/shortcut path bf16 precision).
    out_dtype: dtype of the streamed output; defaults to x.dtype.
    """
    if not (isinstance(params, dict) and params.get("_prepared", False)):
        params = prepare_resnet_block_fc_params(params, compute_dtype=compute_dtype)
    compute_dtype = params["compute_dtype"]
    size_in, size_h, size_out, fi, fh, fo = params["sizes"]
    use_shortcut = params["use_shortcut"]

    assert x.shape[-1] == size_in, (x.shape, size_in)
    lead_shape = x.shape[:-1]
    out_dtype = x.dtype if out_dtype is None else jnp.dtype(out_dtype)

    x2 = x.reshape(-1, size_in)
    M = x2.shape[0]
    if M == 0:  # guard the empty-input case
        return jnp.zeros((*lead_shape, size_out), dtype=out_dtype)

    stream_dtype = jnp.float32 if compute_dtype is None else compute_dtype

    # Row tile: split M evenly into ~block_rows tiles (multiple of 8), and
    # keep >=2 grid steps when there is enough work (v7x has 2 TensorCores).
    if block_rows is None:
        block_rows = 1024 if (fi + fo) <= 512 else 256
    n_tiles = _cdiv(M, max(block_rows, 8))
    if n_tiles == 1 and M > 256:
        n_tiles = 2
    tm = _round_up(_cdiv(M, n_tiles), 8)
    mp = _round_up(M, tm)
    grid = mp // tm

    if x2.dtype != stream_dtype:
        x2 = x2.astype(stream_dtype)
    if mp != M or fi != size_in:
        x2 = jnp.pad(x2, ((0, mp - M), (0, fi - size_in)))

    w0_p, b0_p, w1_p, b1_p = params["w0"], params["b0"], params["w1"], params["b1"]
    args = [x2, w0_p, b0_p, w1_p, b1_p]
    if use_shortcut:
        args.append(params["ws"])

    kernel = functools.partial(_resnet_block_kernel,
                               use_shortcut=use_shortcut,
                               compute_dtype=compute_dtype)

    # VMEM budget: weights budgeted at 2x (covers the no-Buffered fallback),
    # double-buffered x/out streams, plus slack; capped at 75% of capacity.
    wbytes = jnp.dtype(w0_p.dtype).itemsize
    weight_bytes = (fi * fh + fh * fo + (fi * fo if use_shortcut else 0)) * wbytes
    bias_bytes = (fh + fo) * 4
    stream_bytes = 2 * tm * (fi * jnp.dtype(stream_dtype).itemsize
                             + fo * jnp.dtype(out_dtype).itemsize)
    need = 2 * (weight_bytes + bias_bytes) + stream_bytes + (4 << 20)
    vmem_cap = _vmem_capacity_bytes()
    vmem_limit = int(min(max(need, 16 << 20), (vmem_cap * 3) // 4))

    def run(single_buffer_weights):
        if single_buffer_weights:
            def wspec(shape):
                return pl.BlockSpec(shape, lambda i: (0, 0),
                                    pipeline_mode=pl.Buffered(1))
        else:
            def wspec(shape):
                return pl.BlockSpec(shape, lambda i: (0, 0))

        in_specs = [
            pl.BlockSpec((tm, fi), lambda i: (i, 0)),   # x tile (streamed)
            wspec((fi, fh)),                            # w0 (resident)
            wspec((1, fh)),                             # b0 (resident)
            wspec((fh, fo)),                            # w1 (resident)
            wspec((1, fo)),                             # b1 (resident)
        ]
        if use_shortcut:
            in_specs.append(wspec((fi, fo)))            # ws (resident)

        return pl.pallas_call(
            kernel,
            out_shape=jax.ShapeDtypeStruct((mp, fo), out_dtype),
            grid_spec=pltpu.PrefetchScalarGridSpec(
                num_scalar_prefetch=0,
                grid=(grid,),
                in_specs=in_specs,
                out_specs=pl.BlockSpec((tm, fo), lambda i: (i, 0)),
            ),
            compiler_params=pltpu.CompilerParams(
                dimension_semantics=("parallel",),
                vmem_limit_bytes=vmem_limit),
        )(*args)

    global _SINGLE_BUFFER_OK
    if _SINGLE_BUFFER_OK is None:
        try:
            out = run(True)
            _SINGLE_BUFFER_OK = True
        except Exception:
            _SINGLE_BUFFER_OK = False
            out = run(False)
    else:
        out = run(_SINGLE_BUFFER_OK)

    if mp != M or fo != size_out:
        out = out[:M, :size_out]
    return out.reshape(*lead_shape, size_out)


def init_resnet_block_fc(key, size_in, size_out=None, size_h=None):
    """Deterministic synthetic init matching the module's parameter shapes.

    fc_1.weight is zero-initialized exactly as in the PyTorch __init__.
    """
    if size_out is None:
        size_out = size_in
    if size_h is None:
        size_h = min(size_in, size_out)
    k0w, k0b, k1b, ksw = jax.random.split(key, 4)
    params = {
        # stored as (in, out) == PyTorch weight.T
        "w0": jax.random.normal(k0w, (size_in, size_h), jnp.float32) * 0.1,
        "b0": jax.random.normal(k0b, (size_h,), jnp.float32) * 0.1,
        "w1": jnp.zeros((size_h, size_out), jnp.float32),  # nn.init.zeros_
        "b1": jax.random.normal(k1b, (size_out,), jnp.float32) * 0.1,
    }
    if size_in != size_out:
        params["ws"] = jax.random.normal(ksw, (size_in, size_out), jnp.float32) * 0.1
    return params


def _reference(x, params):
    """Pure-JAX reference of the PyTorch forward."""
    relu = lambda v: jnp.maximum(v, 0.0)
    net = relu(x) @ params["w0"] + params["b0"]
    dx = relu(net) @ params["w1"] + params["b1"]
    x_s = x @ params["ws"] if "ws" in params else x
    return x_s + dx


if __name__ == "__main__":
    key = jax.random.PRNGKey(0)
    kx, kp1, kp2, kw1, kx3 = jax.random.split(key, 5)

    # Case 1: small shapes, shortcut Linear (size_in != size_out).
    batch, seq = 2, 8
    size_in, size_out = 32, 64
    x = jax.random.normal(kx, (batch, seq, size_in), jnp.float32)
    params = init_resnet_block_fc(kp1, size_in, size_out)
    # Replace the zero-init fc_1 weight with random values so the fc_1 matmul
    # path is actually exercised by the correctness check.
    params["w1"] = 0.1 * jax.random.normal(kw1, params["w1"].shape, jnp.float32)
    y = jax.block_until_ready(resnet_block_fc(x, params))
    y_ref = _reference(x.reshape(-1, size_in), params).reshape(batch, seq, size_out)
    assert y.shape == (batch, seq, size_out)
    assert jnp.allclose(y, y_ref, atol=1e-4, rtol=1e-4)

    # Case 2: identity shortcut, exact PyTorch init (zero fc_1 weight).
    params_id = init_resnet_block_fc(kp2, size_in)
    y2 = jax.block_until_ready(resnet_block_fc(x, params_id))
    y2_ref = _reference(x.reshape(-1, size_in), params_id).reshape(batch, seq, size_in)
    assert jnp.allclose(y2, y2_ref, atol=1e-4, rtol=1e-4)

    # Case 3: more rows (M=400, even-split row tiles -> 2 grid steps), using
    # one-time prepared parameters reused across calls.
    b3, s3, f3_in, f3_out = 4, 100, 192, 256
    x3 = jax.random.normal(kx3, (b3, s3, f3_in), jnp.float32)
    params3 = init_resnet_block_fc(kp1, f3_in, f3_out)
    params3["w1"] = 0.05 * jax.random.normal(kw1, params3["w1"].shape, jnp.float32)
    prep3_f32 = prepare_resnet_block_fc_params(params3)
    y3 = jax.block_until_ready(resnet_block_fc(x3, prep3_f32, block_rows=256))
    y3_ref = _reference(x3.reshape(-1, f3_in), params3).reshape(b3, s3, f3_out)
    assert jnp.allclose(y3, y3_ref, atol=1e-3, rtol=1e-3)
    # Reuse the prepared params (no re-pad / re-cast of the weights).
    y3_again = jax.block_until_ready(resnet_block_fc(x3, prep3_f32))
    assert jnp.allclose(y3_again, y3_ref, atol=1e-3, rtol=1e-3)

    # Case 3b: bf16 matmuls + bf16 x stream, f32 accumulation (loose tolerance).
    prep3_bf16 = prepare_resnet_block_fc_params(params3, compute_dtype=jnp.bfloat16)
    y3b = jax.block_until_ready(resnet_block_fc(x3, prep3_bf16))
    assert jnp.allclose(y3b, y3_ref, atol=2e-1, rtol=2e-1)

    print("KERNEL_OK")
</pallas_src>

<mosaic_0001>
module attributes {stable_mosaic.version = 11 : i64} {
  func.func @_resnet_block_kernel(%arg0: i32, %arg1: memref<16x128xf32, #tpu.memory_space<vmem>>, %arg2: memref<128x128xf32, #tpu.memory_space<vmem>>, %arg3: memref<1x128xf32, #tpu.memory_space<vmem>>, %arg4: memref<128x128xf32, #tpu.memory_space<vmem>>, %arg5: memref<1x128xf32, #tpu.memory_space<vmem>>, %arg6: memref<128x128xf32, #tpu.memory_space<vmem>>, %arg7: memref<16x128xf32, #tpu.memory_space<vmem>>) attributes {dimension_semantics = [#tpu.dimension_semantics<parallel>], iteration_bounds = array<i64: 1>, scalar_prefetch = 0 : i64, scratch_operands = 0 : i64, tpu.core_type = #tpu.core_type<tc>, window_params = [{transform_indices = @transform_0, window_bounds = array<i64: 16, 128>}, {pipeline_mode = #tpu.pipeline_mode<synchronous>, transform_indices = @transform_1, window_bounds = array<i64: 128, 128>}, {pipeline_mode = #tpu.pipeline_mode<synchronous>, transform_indices = @transform_2, window_bounds = array<i64: 1, 128>}, {pipeline_mode = #tpu.pipeline_mode<synchronous>, transform_indices = @transform_3, window_bounds = array<i64: 128, 128>}, {pipeline_mode = #tpu.pipeline_mode<synchronous>, transform_indices = @transform_4, window_bounds = array<i64: 1, 128>}, {pipeline_mode = #tpu.pipeline_mode<synchronous>, transform_indices = @transform_5, window_bounds = array<i64: 128, 128>}, {transform_indices = @transform_6, window_bounds = array<i64: 16, 128>}]} {
    %c0 = arith.constant 0 : index
    %c0_0 = arith.constant 0 : index
    %0 = vector.load %arg1[%c0, %c0_0] : memref<16x128xf32, #tpu.memory_space<vmem>>, vector<16x128xf32>
    %cst = arith.constant 0.000000e+00 : f32
    %1 = vector.broadcast %cst : f32 to vector<16x128xf32>
    %2 = arith.maximumf %0, %1 : vector<16x128xf32>
    %c0_1 = arith.constant 0 : index
    %c0_2 = arith.constant 0 : index
    %3 = vector.load %arg2[%c0_1, %c0_2] : memref<128x128xf32, #tpu.memory_space<vmem>>, vector<128x128xf32>
    %cst_3 = arith.constant dense<0.000000e+00> : vector<16x128xf32>
    %4 = tpu.matmul %2, %3, %cst_3 {dimension_numbers = #tpu.dot_dimension_numbers<[1], [0], [0], [1], [0, 0, 1, 1], [], []>} : vector<16x128xf32>, vector<128x128xf32>, vector<16x128xf32> -> vector<16x128xf32>
    %c0_4 = arith.constant 0 : index
    %c0_5 = arith.constant 0 : index
    %5 = vector.load %arg3[%c0_4, %c0_5] : memref<1x128xf32, #tpu.memory_space<vmem>>, vector<1x128xf32>
    %6 = vector.broadcast %5 : vector<1x128xf32> to vector<16x128xf32>
    %7 = arith.addf %4, %6 : vector<16x128xf32>
    %cst_6 = arith.constant 0.000000e+00 : f32
    %8 = vector.broadcast %cst_6 : f32 to vector<16x128xf32>
    %9 = arith.maximumf %7, %8 : vector<16x128xf32>
    %c0_7 = arith.constant 0 : index
    %c0_8 = arith.constant 0 : index
    %10 = vector.load %arg4[%c0_7, %c0_8] : memref<128x128xf32, #tpu.memory_space<vmem>>, vector<128x128xf32>
    %cst_9 = arith.constant dense<0.000000e+00> : vector<16x128xf32>
    %11 = tpu.matmul %9, %10, %cst_9 {dimension_numbers = #tpu.dot_dimension_numbers<[1], [0], [0], [1], [0, 0, 1, 1], [], []>} : vector<16x128xf32>, vector<128x128xf32>, vector<16x128xf32> -> vector<16x128xf32>
    %c0_10 = arith.constant 0 : index
    %c0_11 = arith.constant 0 : index
    %12 = vector.load %arg5[%c0_10, %c0_11] : memref<1x128xf32, #tpu.memory_space<vmem>>, vector<1x128xf32>
    %13 = vector.broadcast %12 : vector<1x128xf32> to vector<16x128xf32>
    %14 = arith.addf %11, %13 : vector<16x128xf32>
    %c0_12 = arith.constant 0 : index
    %c0_13 = arith.constant 0 : index
    %15 = vector.load %arg6[%c0_12, %c0_13] : memref<128x128xf32, #tpu.memory_space<vmem>>, vector<128x128xf32>
    %cst_14 = arith.constant dense<0.000000e+00> : vector<16x128xf32>
    %16 = tpu.matmul %0, %15, %cst_14 {dimension_numbers = #tpu.dot_dimension_numbers<[1], [0], [0], [1], [0, 0, 1, 1], [], []>} : vector<16x128xf32>, vector<128x128xf32>, vector<16x128xf32> -> vector<16x128xf32>
    %17 = arith.addf %16, %14 : vector<16x128xf32>
    %c0_15 = arith.constant 0 : index
    %c0_16 = arith.constant 0 : index
    %18 = vector.load %arg7[%c0_15, %c0_16] : memref<16x128xf32, #tpu.memory_space<vmem>>, vector<16x128xf32>
    tpu.vector_store %arg7[%c0_15, %c0_16], %17 {strides = array<i32>} : memref<16x128xf32, #tpu.memory_space<vmem>>, vector<16x128xf32>,
    return
  }
  func.func @transform_0(%arg0: i32) -> (i32, i32) {
    %c0_i32 = arith.constant 0 : i32
    %c0_i32_0 = arith.constant 0 : i32
    return %arg0, %c0_i32 : i32, i32
  }
  func.func @transform_1(%arg0: i32) -> (i32, i32) {
    %c0_i32 = arith.constant 0 : i32
    %c0_i32_0 = arith.constant 0 : i32
    %c0_i32_1 = arith.constant 0 : i32
    return %c0_i32, %c0_i32_0 : i32, i32
  }
  func.func @transform_2(%arg0: i32) -> (i32, i32) {
    %c0_i32 = arith.constant 0 : i32
    %c0_i32_0 = arith.constant 0 : i32
    %c0_i32_1 = arith.constant 0 : i32
    return %c0_i32, %c0_i32_0 : i32, i32
  }
  func.func @transform_3(%arg0: i32) -> (i32, i32) {
    %c0_i32 = arith.constant 0 : i32
    %c0_i32_0 = arith.constant 0 : i32
    %c0_i32_1 = arith.constant 0 : i32
    return %c0_i32, %c0_i32_0 : i32, i32
  }
  func.func @transform_4(%arg0: i32) -> (i32, i32) {
    %c0_i32 = arith.constant 0 : i32
    %c0_i32_0 = arith.constant 0 : i32
    %c0_i32_1 = arith.constant 0 : i32
    return %c0_i32, %c0_i32_0 : i32, i32
  }
  func.func @transform_5(%arg0: i32) -> (i32, i32) {
    %c0_i32 = arith.constant 0 : i32
    %c0_i32_0 = arith.constant 0 : i32
    %c0_i32_1 = arith.constant 0 : i32
    return %c0_i32, %c0_i32_0 : i32, i32
  }
  func.func @transform_6(%arg0: i32) -> (i32, i32) {
    %c0_i32 = arith.constant 0 : i32
    %c0_i32_0 = arith.constant 0 : i32
    return %arg0, %c0_i32 : i32, i32
  }
}

module attributes {stable_mosaic.version = 11 : i64} {
  func.func @_resnet_block_kernel(%arg0: i32, %arg1: memref<16x128xf32, #tpu.memory_space<vmem>>, %arg2: memref<128x128xf32, #tpu.memory_space<vmem>>, %arg3: memref<1x128xf32, #tpu.memory_space<vmem>>, %arg4: memref<128x128xf32, #tpu.memory_space<vmem>>, %arg5: memref<1x128xf32, #tpu.memory_space<vmem>>, %arg6: memref<128x128xf32, #tpu.memory_space<vmem>>, %arg7: memref<16x128xf32, #tpu.memory_space<vmem>>) attributes {dimension_semantics = [#tpu.dimension_semantics<parallel>], iteration_bounds = array<i64: 1>, scalar_prefetch = 0 : i64, scratch_operands = 0 : i64, tpu.core_type = #tpu.core_type<tc>, window_params = [{transform_indices = @transform_0, window_bounds = array<i64: 16, 128>}, {pipeline_mode = #tpu.pipeline_mode<synchronous>, transform_indices = @transform_1, window_bounds = array<i64: 128, 128>}, {pipeline_mode = #tpu.pipeline_mode<synchronous>, transform_indices = @transform_2, window_bounds = array<i64: 1, 128>}, {pipeline_mode = #tpu.pipeline_mode<synchronous>, transform_indices = @transform_3, window_bounds = array<i64: 128, 128>}, {pipeline_mode = #tpu.pipeline_mode<synchronous>, transform_indices = @transform_4, window_bounds = array<i64: 1, 128>}, {pipeline_mode = #tpu.pipeline_mode<synchronous>, transform_indices = @transform_5, window_bounds = array<i64: 128, 128>}, {transform_indices = @transform_6, window_bounds = array<i64: 16, 128>}]} {
    %c0 = arith.constant 0 : index
    %c0_0 = arith.constant 0 : index
    %0 = vector.load %arg1[%c0, %c0_0] : memref<16x128xf32, #tpu.memory_space<vmem>>, vector<16x128xf32>
    %cst = arith.constant 0.000000e+00 : f32
    %1 = vector.broadcast %cst : f32 to vector<16x128xf32>
    %2 = arith.maximumf %0, %1 : vector<16x128xf32>
    %c0_1 = arith.constant 0 : index
    %c0_2 = arith.constant 0 : index
    %3 = vector.load %arg2[%c0_1, %c0_2] : memref<128x128xf32, #tpu.memory_space<vmem>>, vector<128x128xf32>
    %cst_3 = arith.constant dense<0.000000e+00> : vector<16x128xf32>
    %4 = tpu.matmul %2, %3, %cst_3 {dimension_numbers = #tpu.dot_dimension_numbers<[1], [0], [0], [1], [0, 0, 1, 1], [], []>} : vector<16x128xf32>, vector<128x128xf32>, vector<16x128xf32> -> vector<16x128xf32>
    %c0_4 = arith.constant 0 : index
    %c0_5 = arith.constant 0 : index
    %5 = vector.load %arg3[%c0_4, %c0_5] : memref<1x128xf32, #tpu.memory_space<vmem>>, vector<1x128xf32>
    %6 = vector.broadcast %5 : vector<1x128xf32> to vector<16x128xf32>
    %7 = arith.addf %4, %6 : vector<16x128xf32>
    %cst_6 = arith.constant 0.000000e+00 : f32
    %8 = vector.broadcast %cst_6 : f32 to vector<16x128xf32>
    %9 = arith.maximumf %7, %8 : vector<16x128xf32>
    %c0_7 = arith.constant 0 : index
    %c0_8 = arith.constant 0 : index
    %10 = vector.load %arg4[%c0_7, %c0_8] : memref<128x128xf32, #tpu.memory_space<vmem>>, vector<128x128xf32>
    %cst_9 = arith.constant dense<0.000000e+00> : vector<16x128xf32>
    %11 = tpu.matmul %9, %10, %cst_9 {dimension_numbers = #tpu.dot_dimension_numbers<[1], [0], [0], [1], [0, 0, 1, 1], [], []>} : vector<16x128xf32>, vector<128x128xf32>, vector<16x128xf32> -> vector<16x128xf32>
    %c0_10 = arith.constant 0 : index
    %c0_11 = arith.constant 0 : index
    %12 = vector.load %arg5[%c0_10, %c0_11] : memref<1x128xf32, #tpu.memory_space<vmem>>, vector<1x128xf32>
    %13 = vector.broadcast %12 : vector<1x128xf32> to vector<16x128xf32>
    %14 = arith.addf %11, %13 : vector<16x128xf32>
    %c0_12 = arith.constant 0 : index
    %c0_13 = arith.constant 0 : index
    %15 = vector.load %arg6[%c0_12, %c0_13] : memref<128x128xf32, #tpu.memory_space<vmem>>, vector<128x128xf32>
    %cst_14 = arith.constant dense<0.000000e+00> : vector<16x128xf32>
    %16 = tpu.matmul %0, %15, %cst_14 {dimension_numbers = #tpu.dot_dimension_numbers<[1], [0], [0], [1], [0, 0, 1, 1], [], []>} : vector<16x128xf32>, vector<128x128xf32>, vector<16x128xf32> -> vector<16x128xf32>
    %17 = arith.addf %16, %14 : vector<16x128xf32>
    %c0_15 = arith.constant 0 : index
    %c0_16 = arith.constant 0 : index
    %18 = vector.load %arg7[%c0_15, %c0_16] : memref<16x128xf32, #tpu.memory_space<vmem>>, vector<16x128xf32>
    tpu.vector_store %arg7[%c0_15, %c0_16], %17 {strides = array<i32>} : memref<16x128xf32, #tpu.memory_space<vmem>>, vector<16x128xf32>,
    return
  }
  func.func @transform_0(%arg0: i32) -> (i32, i32) {
    %c0_i32 = arith.constant 0 : i32
    %c0_i32_0 = arith.constant 0 : i32
    return %arg0, %c0_i32 : i32, i32
  }
  func.func @transform_1(%arg0: i32) -> (i32, i32) {
    %c0_i32 = arith.constant 0 : i32
    %c0_i32_0 = arith.constant 0 : i32
    %c0_i32_1 = arith.constant 0 : i32
    return %c0_i32, %c0_i32_0 : i32, i32
  }
  func.func @transform_2(%arg0: i32) -> (i32, i32) {
    %c0_i32 = arith.constant 0 : i32
    %c0_i32_0 = arith.constant 0 : i32
    %c0_i32_1 = arith.constant 0 : i32
    return %c0_i32, %c0_i32_0 : i32, i32
  }
  func.func @transform_3(%arg0: i32) -> (i32, i32) {
    %c0_i32 = arith.constant 0 : i32
    %c0_i32_0 = arith.constant 0 : i32
    %c0_i32_1 = arith.constant 0 : i32
    return %c0_i32, %c0_i32_0 : i32, i32
  }
  func.func @transform_4(%arg0: i32) -> (i32, i32) {
    %c0_i32 = arith.constant 0 : i32
    %c0_i32_0 = arith.constant 0 : i32
    %c0_i32_1 = arith.constant 0 : i32
    return %c0_i32, %c0_i32_0 : i32, i32
  }
  func.func @transform_5(%arg0: i32) -> (i32, i32) {
    %c0_i32 = arith.constant 0 : i32
    %c0_i32_0 = arith.constant 0 : i32
    %c0_i32_1 = arith.constant 0 : i32
    return %c0_i32, %c0_i32_0 : i32, i32
  }
  func.func @transform_6(%arg0: i32) -> (i32, i32) {
    %c0_i32 = arith.constant 0 : i32
    %c0_i32_0 = arith.constant 0 : i32
    return %arg0, %c0_i32 : i32, i32
  }
}

</mosaic_0001>

<bundles_post_ra>
// kernel: tpu_custom_call.1
= control target key start
LH: loop header
LB: loop body
LE: loop exit
PB: predicated region body
PF: predicated region fallthrough
CT: control target
= control target key end

     0   :  { %11 = vsyncpa [#allocation3], 0  ;;  %s920_s0 = inlined_call_operand.hbm [shape: f32[16,128], index: 0, kind: input, shape index: {}]   ;;  %s921_s1 = inlined_call_operand.hbm [shape: f32[128,128], index: 1, kind: input, shape index: {}]   ;;  %s922_s2 = inlined_call_operand.vmem [shape: f32[1,128], index: 2, kind: input, shape index: {}]   ;;  %s923_s3 = inlined_call_operand.hbm [shape: f32[128,128], index: 3, kind: input, shape index: {}]   ;;  %s924_s4 = inlined_call_operand.vmem [shape: f32[1,128], index: 4, kind: input, shape index: {}]   ;;  %s925_s5 = inlined_call_operand.hbm [shape: f32[128,128], index: 5, kind: input, shape index: {}]   ;;  %s926_s6 = inlined_call_operand.hbm [shape: f32[16,128], index: 6, kind: output, shape index: {}]  }
   0x1   :  { %12 = vsyncpa [#allocation6], 0 }
   0x2   :  { %13 = vsyncpa [#allocation9], 0 }
   0x3   :  { %14 = vsyncpa [#allocation4], 0  ;;  %s779_s21 = smov [#allocation5]   ;;  %s780_s23 = smov [#allocation2]  }
   0x4   :  { %s32_s22 = sshll.u32 %s779_s21, 4  ;;  %s20_s24 = sshll.u32 %s780_s23, 4  ;;  %s33_s22 = int_to_ptr.vmem [resolvable:$true] %s32_s22  ;;  %s821_s24 = int_to_ptr.vmem [resolvable:$true] %s20_s24 }
   0x5   :  { %s661_s27 = scalar_lea.hbm %s921_s1, 2048 }
   0x6   :  { %p662_p0 = scmp.ne.s32.totalorder %s921_s1, %s661_s27  ;;  %p665_p1 = scmp.lt.u32.totalorder %s661_s27, %s921_s1 }
   0x8   :  { %p667_p2 = pnand %p665_p1, %p662_p0 }
   0xa   :  { %670 = shalt.err (!%p667_p2)
}
   0xb   :  { %s671_s8 = scalar_lea.vmem %s33_s22, 2048  ;;  %p676_p4 = scmp.lt.s32.totalorder %s33_s22, %s33_s22 }
   0xc   :  { %p672_p3 = scmp.ne.s32.totalorder %s33_s22, %s671_s8  ;;  %p677_p5 = scmp.lt.s32.totalorder %s671_s8, %s671_s8 }
   0xe   :  { %p678_p6 = por %p677_p5, %p676_p4 }
  0x10   :  { %p679_p7 = pnand %p678_p6, %p672_p3 }
  0x12   :  { %682 = shalt.err (!%p679_p7)
}
  0x13   :  { %s781_s9 = smov 128   ;;  %s782_s10 = smov 8  }
  0x14   :  { %38 = dma.hbm_to_vmem [thread:$0]  %s921_s1, 2048, %s33_s22, [#allocation6], %s781_s9, %s781_s9, %s782_s10  }
  0x15   :  { %s683_s15 = scalar_lea.hbm %s920_s0, 256 }
  0x16   :  { %p684_p8 = scmp.ne.s32.totalorder %s920_s0, %s683_s15  ;;  %p687_p9 = scmp.lt.u32.totalorder %s683_s15, %s920_s0 }
  0x18   :  { %p689_p10 = pnand %p687_p9, %p684_p8 }
  0x1a   :  { %692 = shalt.err (!%p689_p10)
}
  0x1b   :  { %s693_s20 = scalar_lea.vmem %s821_s24, 256  ;;  %p698_p12 = scmp.lt.s32.totalorder %s821_s24, %s821_s24 }
  0x1c   :  { %p694_p11 = scmp.ne.s32.totalorder %s821_s24, %s693_s20  ;;  %p699_p13 = scmp.lt.s32.totalorder %s693_s20, %s693_s20 }
  0x1e   :  { %p700_p0 = por %p699_p13, %p698_p12 }
  0x20   :  { %p701_p1 = pnand %p700_p0, %p694_p11 }
  0x22   :  { %704 = shalt.err (!%p701_p1)
}
  0x23   :  { %26 = dma.hbm_to_vmem [thread:$0]  %s920_s0, 256, %s821_s24, [#allocation3], %s781_s9, %s781_s9, %s782_s10  }
  0x24   :  { %s783_s22 = smov [#allocation7]   ;;  %s784_s25 = smov [#allocation8]  }
  0x25   :  { %s46_s23 = sshll.u32 %s783_s22, 4  ;;  %s60_s26 = sshll.u32 %s784_s25, 4  ;;  %s47_s23 = int_to_ptr.vmem [resolvable:$true] %s46_s23  ;;  %s858_s26 = int_to_ptr.vmem [resolvable:$true] %s60_s26 }
  0x26   :  { %s705_s29 = scalar_lea.hbm %s923_s3, 2048 }
  0x27   :  { %p706_p2 = scmp.ne.s32.totalorder %s923_s3, %s705_s29  ;;  %p709_p3 = scmp.lt.u32.totalorder %s705_s29, %s923_s3 }
  0x29   :  { %p711_p4 = pnand %p709_p3, %p706_p2 }
  0x2b   :  { %714 = shalt.err (!%p711_p4)
}
  0x2c   :  { %s715_s0 = scalar_lea.vmem %s47_s23, 2048  ;;  %p720_p6 = scmp.lt.s32.totalorder %s47_s23, %s47_s23 }
  0x2d   :  { %p716_p5 = scmp.ne.s32.totalorder %s47_s23, %s715_s0  ;;  %p721_p7 = scmp.lt.s32.totalorder %s715_s0, %s715_s0 }
  0x2f   :  { %p722_p8 = por %p721_p7, %p720_p6 }
  0x31   :  { %p723_p9 = pnand %p722_p8, %p716_p5 }
  0x33   :  { %726 = shalt.err (!%p723_p9)
}
  0x34   :  { %52 = dma.hbm_to_vmem [thread:$0]  %s923_s3, 2048, %s47_s23, [#allocation6], %s781_s9, %s781_s9, %s782_s10  }
  0x35   :  { %s727_s15 = scalar_lea.hbm %s925_s5, 2048 }
  0x36   :  { %p728_p10 = scmp.ne.s32.totalorder %s925_s5, %s727_s15  ;;  %p731_p11 = scmp.lt.u32.totalorder %s727_s15, %s925_s5 }
  0x38   :  { %p733_p12 = pnand %p731_p11, %p728_p10 }
  0x3a   :  { %736 = shalt.err (!%p733_p12)
}
  0x3b   :  { %s737_s20 = scalar_lea.vmem %s858_s26, 2048  ;;  %p742_p0 = scmp.lt.s32.totalorder %s858_s26, %s858_s26 }
  0x3c   :  { %p738_p13 = scmp.ne.s32.totalorder %s858_s26, %s737_s20  ;;  %p743_p1 = scmp.lt.s32.totalorder %s737_s20, %s737_s20 }
  0x3e   :  { %p744_p2 = por %p743_p1, %p742_p0 }
  0x40   :  { %p745_p3 = pnand %p744_p2, %p738_p13 }
  0x42   :  { %748 = shalt.err (!%p745_p3)
}
  0x43   :  { %66 = dma.hbm_to_vmem [thread:$0]  %s925_s5, 2048, %s858_s26, [#allocation9], %s781_s9, %s781_s9, %s782_s10  }
  0x44   :  { %771 = dma.done.wait [#allocation3], 256  }
  0x45   :  { %772 = vsyncadd [#allocation3], 4294967040 }
  0x46   :  { %773 = dma.done.wait [#allocation6], 4096  }
  0x47   :  { %774 = vsyncadd [#allocation6], 4294963200 }
  0x48   :  { %775 = dma.done.wait [#allocation9], 2048  }
  0x49   :  { %776 = vsyncadd [#allocation9], 4294965248  ;;  %v83_v0 = vld [vmem:[#allocation5] sm:$0xff]  ;;  %v84_v1 = vld [vmem:[#allocation5 + $0x8] sm:$0xff]  ;;  %s785_s23 = smov [#allocation10]  }
  0x4a   :  { %v85_v2 = vld [vmem:[#allocation5 + $0x10] sm:$0xff]  ;;  %v554_v3 = vpack.c.bf16 %v84_v1, %v83_v0  ;;  %v86_v4 = vld [vmem:[#allocation5 + $0x18] sm:$0xff]  ;;  %v87_v6 = vld [vmem:[#allocation5 + $0x20] sm:$0xff]  ;;  %s379_s25 = sshll.u32 %s785_s23, 4  ;;  %s380_s25 = int_to_ptr.vmem [resolvable:$true] %s379_s25 }
  0x4b   :  { %v558_v5 = vpack.c.bf16 %v86_v4, %v85_v2  ;;  %v88_v7 = vld [vmem:[#allocation5 + $0x28] sm:$0xff]  ;;  %v89_v9 = vld [vmem:[#allocation5 + $0x30] sm:$0xff]  ;;  %v90_v10 = vld [vmem:[#allocation5 + $0x38] sm:$0xff]  ;;  %s749_s26 = scalar_lea.vmem %s380_s25, 256  ;;  %p754_p5 = scmp.lt.s32.totalorder %s380_s25, %s380_s25 }
  0x4c   :  { %555 = vmatprep.subr.bf16.mxu0 %v554_v3  ;;  %v562_v8 = vpack.c.bf16 %v88_v7, %v87_v6  ;;  %v895_v11 = vld [vmem:[#allocation2] sm:$0xff]  ;;  %v183_v13 = vld [vmem:[#allocation7] sm:$0xff]  ;;  %v184_v14 = vld [vmem:[#allocation7 + $0x8] sm:$0xff]  ;;  %v566_v21 = vpack.c.bf16 %v90_v10, %v89_v9  ;;  %p750_p4 = scmp.ne.s32.totalorder %s380_s25, %s749_s26  ;;  %p755_p6 = scmp.lt.s32.totalorder %s749_s26, %s749_s26 }
  0x4d   :  { %557 = vmatpush3.bf16.msra.mxu0 %v554_v3  ;;  %v81_v12 = vmax.f32 %v895_v11, 0.0  ;;  %v185_v15 = vld [vmem:[#allocation7 + $0x10] sm:$0xff]  ;;  %v586_v16 = vpack.c.bf16 %v184_v14, %v183_v13  ;;  %v186_v17 = vld [vmem:[#allocation7 + $0x18] sm:$0xff]  ;;  %v187_v19 = vld [vmem:[#allocation7 + $0x20] sm:$0xff] }
  0x4e   :  { %559 = vmatprep.subr.bf16.mxu0 %v558_v5  ;;  %v590_v18 = vpack.c.bf16 %v186_v17, %v185_v15  ;;  %v188_v20 = vld [vmem:[#allocation7 + $0x28] sm:$0xff]  ;;  %v91_v22 = vld [vmem:[#allocation5 + $0x40] sm:$0xff]  ;;  %v189_v25 = vld [vmem:[#allocation7 + $0x30] sm:$0xff]  ;;  %p756_p7 = por %p755_p6, %p754_p5 }
  0x4f   :  { %481 = vmatprep.mubr.f32.mxu0 %v81_v12  ;;  %587 = vmatprep.subr.bf16.mxu1 %v586_v16  ;;  %v92_v23 = vld [vmem:[#allocation5 + $0x48] sm:$0xff]  ;;  %v594_v24 = vpack.c.bf16 %v188_v20, %v187_v19  ;;  %v190_v26 = vld [vmem:[#allocation7 + $0x38] sm:$0xff]  ;;  %v93_v28 = vld [vmem:[#allocation5 + $0x50] sm:$0xff] }
  0x50   :  { %589 = vmatpush3.bf16.msra.mxu1 %v586_v16  ;;  %v570_v27 = vpack.c.bf16 %v92_v23, %v91_v22  ;;  %v94_v29 = vld [vmem:[#allocation5 + $0x58] sm:$0xff]  ;;  %v598_v30 = vpack.c.bf16 %v190_v26, %v189_v25  ;;  %v191_v31 = vld [vmem:[#allocation7 + $0x40] sm:$0xff]  ;;  %v192_v32 = vld [vmem:[#allocation7 + $0x48] sm:$0xff]  ;;  %p757_p8 = pnand %p756_p7, %p750_p4 }
  0x51   :  { %561 = vmatpush3.bf16.msra.mxu0 %v558_v5  ;;  %591 = vmatprep.subr.bf16.mxu1 %v590_v18  ;;  %v574_v33 = vpack.c.bf16 %v94_v29, %v93_v28  ;;  %v95_v34 = vld [vmem:[#allocation5 + $0x60] sm:$0xff]  ;;  %v96_v35 = vld [vmem:[#allocation5 + $0x68] sm:$0xff]  ;;  %v602_v36 = vpack.c.bf16 %v192_v32, %v191_v31  ;;  %v193_v37 = vld [vmem:[#allocation7 + $0x50] sm:$0xff] }
  0x52   :  { %563 = vmatprep.subr.bf16.mxu0 %v562_v8  ;;  %v194_v38 = vld [vmem:[#allocation7 + $0x58] sm:$0xff]  ;;  %v578_v39 = vpack.c.bf16 %v96_v35, %v95_v34  ;;  %v97_v40 = vld [vmem:[#allocation5 + $0x70] sm:$0xff]  ;;  %v195_v43 = vld [vmem:[#allocation7 + $0x60] sm:$0xff] }
  0x53   :  { %v98_v41 = vld [vmem:[#allocation5 + $0x78] sm:$0xff]  ;;  %v606_v42 = vpack.c.bf16 %v194_v38, %v193_v37  ;;  %v196_v44 = vld [vmem:[#allocation7 + $0x68] sm:$0xff]  ;;  %v197_v49 = vld [vmem:[#allocation7 + $0x70] sm:$0xff] }
  0x54   :  { %593 = vmatpush3.bf16.msra.mxu1 %v590_v18  ;;  %v582_v45 = vpack.c.bf16 %v98_v41, %v97_v40  ;;  %v610_v46 = vpack.c.bf16 %v196_v44, %v195_v43  ;;  %v80_v47 = vld [vmem:[#allocation2 + $0x8] sm:$0xff]  ;;  %v281_v52 = vld [vmem:[#allocation8] sm:$0xff]  ;;  %v282_v53 = vld [vmem:[#allocation8 + $0x8] sm:$0xff] }
  0x55   :  { %565 = vmatpush3.bf16.msra.mxu0 %v562_v8  ;;  %595 = vmatprep.subr.bf16.mxu1 %v594_v24  ;;  %v82_v48 = vmax.f32 %v80_v47, 0.0  ;;  %v198_v50 = vld [vmem:[#allocation7 + $0x78] sm:$0xff]  ;;  %v618_v54 = vpack.c.bf16 %v282_v53, %v281_v52  ;;  %v393_v55 = vld [vmem:[%s922_s2] ss:$0 sm:$0xff]  ;;  %v285_v1 = vld [vmem:[#allocation8 + $0x20] sm:$0xff] }
  0x56   :  { %567 = vmatprep.subr.bf16.mxu0 %v566_v21  ;;  %v614_v51 = vpack.c.bf16 %v198_v50, %v197_v49  ;;  %v283_v60 = vld [vmem:[#allocation8 + $0x10] sm:$0xff]  ;;  %v284_v61 = vld [vmem:[#allocation8 + $0x18] sm:$0xff]  ;;  %v286_v2 = vld [vmem:[#allocation8 + $0x28] sm:$0xff] }
  0x57   :  { %v622_v0 = vpack.c.bf16 %v284_v61, %v283_v60  ;;  %v626_v3 = vpack.c.bf16 %v286_v2, %v285_v1  ;;  %v287_v4 = vld [vmem:[#allocation8 + $0x30] sm:$0xff]  ;;  %v288_v5 = vld [vmem:[#allocation8 + $0x38] sm:$0xff]  ;;  %v289_v7 = vld [vmem:[#allocation8 + $0x40] sm:$0xff] }
  0x58   :  { %597 = vmatpush3.bf16.msra.mxu1 %v594_v24  ;;  %v630_v6 = vpack.c.bf16 %v288_v5, %v287_v4  ;;  %v290_v8 = vld [vmem:[#allocation8 + $0x48] sm:$0xff]  ;;  %v291_v10 = vld [vmem:[#allocation8 + $0x50] sm:$0xff]  ;;  %v292_v12 = vld [vmem:[#allocation8 + $0x58] sm:$0xff] }
  0x59   :  { %569 = vmatpush3.bf16.msra.mxu0 %v566_v21  ;;  %599 = vmatprep.subr.bf16.mxu1 %v598_v30  ;;  %v634_v9 = vpack.c.bf16 %v290_v8, %v289_v7  ;;  %v638_v13 = vpack.c.bf16 %v292_v12, %v291_v10  ;;  %v293_v14 = vld [vmem:[#allocation8 + $0x60] sm:$0xff]  ;;  %v294_v15 = vld [vmem:[#allocation8 + $0x68] sm:$0xff]  ;;  %v295_v16 = vld [vmem:[#allocation8 + $0x70] sm:$0xff] }
  0x5a   :  { %571 = vmatprep.subr.bf16.mxu0 %v570_v27  ;;  %v296_v17 = vld [vmem:[#allocation8 + $0x78] sm:$0xff]  ;;  %v394_v19 = vld [vmem:[%s924_s4] ss:$0 sm:$0xff] }
  0x5b   :  { %v646_v18 = vpack.c.bf16 %v296_v17, %v295_v16 }
  0x5c   :  { %601 = vmatpush3.bf16.msra.mxu1 %v598_v30 }
  0x5d   :  { %573 = vmatpush3.bf16.msra.mxu0 %v570_v27  ;;  %603 = vmatprep.subr.bf16.mxu1 %v602_v36 }
  0x5e   :  { %575 = vmatprep.subr.bf16.mxu0 %v574_v33 }
  0x60   :  { %605 = vmatpush3.bf16.msra.mxu1 %v602_v36 }
  0x61   :  { %577 = vmatpush3.bf16.msra.mxu0 %v574_v33  ;;  %607 = vmatprep.subr.bf16.mxu1 %v606_v42 }
  0x62   :  { %579 = vmatprep.subr.bf16.mxu0 %v578_v39 }
  0x64   :  { %609 = vmatpush3.bf16.msra.mxu1 %v606_v42 }
  0x65   :  { %581 = vmatpush3.bf16.msra.mxu0 %v578_v39  ;;  %611 = vmatprep.subr.bf16.mxu1 %v610_v46 }
  0x66   :  { %583 = vmatprep.subr.bf16.mxu0 %v582_v45 }
  0x68   :  { %613 = vmatpush3.bf16.msra.mxu1 %v610_v46 }
  0x69   :  { %585 = vmatpush3.bf16.msra.mxu0 %v582_v45  ;;  %615 = vmatprep.subr.bf16.mxu1 %v614_v51 }
  0x6c   :  { %482 = vmatmul.mubr.f32.vlgmr.msra.gmra.mrb[0].mxu0 %v82_v48  ;;  %617 = vmatpush3.bf16.msra.mxu1 %v614_v51 }
  0x6d   :  { %619 = vmatprep.subr.bf16.mxu1 %v618_v54 }
 0x13f   :  { %v483_v56 = vpop.f32.mrb[0].mxu0 }
 0x140   :  { %v178_v57 = vadd.f32 %v483_v56, %v393_v55  ;;  %v172_v58 = vpop.f32.mrb[1].mxu0 }
 0x141   :  { %v173_v59 = vadd.f32 %v393_v55, %v172_v58 }
 0x142   :  { %v182_v63 = vmax.f32 %v178_v57, 0.0 }
 0x143   :  { %v181_v62 = vmax.f32 %v173_v59, 0.0 }
 0x145   :  { %516 = vmatprep.mubr.f32.mxu1 %v181_v62 }
 0x146   :  { %517 = vmatmul.mubr.f32.vlgmr.msra.gmra.mrb[0].mxu1 %v182_v63 }
 0x147   :  { %621 = vmatpush3.bf16.msra.mxu1 %v618_v54  ;;  %551 = vmatprep.mubr.f32.mxu1 %v895_v11  ;;  %v642_v11 = vpack.c.bf16 %v294_v15, %v293_v14 }
 0x148   :  { %623 = vmatprep.subr.bf16.mxu1 %v622_v0 }
 0x14b   :  { %625 = vmatpush3.bf16.msra.mxu1 %v622_v0 }
 0x14c   :  { %627 = vmatprep.subr.bf16.mxu1 %v626_v3 }
 0x14f   :  { %629 = vmatpush3.bf16.msra.mxu1 %v626_v3 }
 0x150   :  { %631 = vmatprep.subr.bf16.mxu1 %v630_v6 }
 0x153   :  { %633 = vmatpush3.bf16.msra.mxu1 %v630_v6 }
 0x154   :  { %635 = vmatprep.subr.bf16.mxu1 %v634_v9 }
 0x157   :  { %637 = vmatpush3.bf16.msra.mxu1 %v634_v9 }
 0x158   :  { %639 = vmatprep.subr.bf16.mxu1 %v638_v13 }
 0x15b   :  { %641 = vmatpush3.bf16.msra.mxu1 %v638_v13 }
 0x15c   :  { %643 = vmatprep.subr.bf16.mxu1 %v642_v11 }
 0x15f   :  { %645 = vmatpush3.bf16.msra.mxu1 %v642_v11 }
 0x160   :  { %647 = vmatprep.subr.bf16.mxu1 %v646_v18 }
 0x163   :  { %649 = vmatpush3.bf16.msra.mxu1 %v646_v18 }
 0x166   :  { %552 = vmatmul.mubr.f32.vlgmr.msra.gmra.mrb[0].mxu1 %v80_v47 }
 0x239   :  { %v553_v20 = vpop.f32.mrb[0].mxu1 }
 0x23a   :  { %v650_v21 = vadd.f32 %v553_v20, %v394_v19  ;;  %v363_v22 = vpop.f32.mrb[1].mxu1 }
 0x23b   :  { %v651_v23 = vadd.f32 %v394_v19, %v363_v22 }
 0x23c   :  { %373 = vst [vmem:[#allocation10 + $0x8] sm:$0xff] %v650_v21 }
 0x23d   :  { %372 = vst [vmem:[#allocation10] sm:$0xff] %v651_v23 }
 0x23e   :  { %760 = shalt.err (!%p757_p8)
}
 0x23f   :  { %s761_s4 = scalar_lea.hbm %s926_s6, 256 }
 0x240   :  { %p762_p9 = scmp.ne.s32.totalorder %s926_s6, %s761_s4  ;;  %p765_p10 = scmp.lt.u32.totalorder %s761_s4, %s926_s6 }
 0x242   :  { %p767_p11 = pnand %p765_p10, %p762_p9 }
 0x244   :  { %770 = shalt.err (!%p767_p11)
}
 0x245   :  { %385 = dma.vmem_to_hbm [thread:$0]  %s380_s25, 256, %s926_s6, [#allocation4], %s781_s9, %s781_s9, %s782_s10  }
 0x246   :  { %777 = dma.done.wait [#allocation4], 256  }
 0x247   :  { %778 = vsyncadd [#allocation4], 4294967040 }
 0x248   :  { %389 = vsyncpa [#allocation3], 1 }
 0x249   :  { %390 = vsyncpa [#allocation6], 1 }
 0x24a   :  { %391 = vsyncpa [#allocation9], 1 }
 0x24b   :  { %392 = vsyncpa [#allocation4], 1 }

// kernel: tpu_custom_call.1
= control target key start
LH: loop header
LB: loop body
LE: loop exit
PB: predicated region body
PF: predicated region fallthrough
CT: control target
= control target key end

     0   :  { %11 = vsyncpa [#allocation3], 0  ;;  %s920_s0 = inlined_call_operand.hbm [shape: f32[16,128], index: 0, kind: input, shape index: {}]   ;;  %s921_s1 = inlined_call_operand.hbm [shape: f32[128,128], index: 1, kind: input, shape index: {}]   ;;  %s922_s2 = inlined_call_operand.vmem [shape: f32[1,128], index: 2, kind: input, shape index: {}]   ;;  %s923_s3 = inlined_call_operand.hbm [shape: f32[128,128], index: 3, kind: input, shape index: {}]   ;;  %s924_s4 = inlined_call_operand.vmem [shape: f32[1,128], index: 4, kind: input, shape index: {}]   ;;  %s925_s5 = inlined_call_operand.hbm [shape: f32[128,128], index: 5, kind: input, shape index: {}]   ;;  %s926_s6 = inlined_call_operand.hbm [shape: f32[16,128], index: 6, kind: output, shape index: {}]  }
   0x1   :  { %12 = vsyncpa [#allocation6], 0 }
   0x2   :  { %13 = vsyncpa [#allocation9], 0 }
   0x3   :  { %14 = vsyncpa [#allocation4], 0  ;;  %s779_s21 = smov [#allocation5]   ;;  %s780_s23 = smov [#allocation2]  }
   0x4   :  { %s32_s22 = sshll.u32 %s779_s21, 4  ;;  %s20_s24 = sshll.u32 %s780_s23, 4  ;;  %s33_s22 = int_to_ptr.vmem [resolvable:$true] %s32_s22  ;;  %s821_s24 = int_to_ptr.vmem [resolvable:$true] %s20_s24 }
   0x5   :  { %s661_s27 = scalar_lea.hbm %s921_s1, 2048 }
   0x6   :  { %p662_p0 = scmp.ne.s32.totalorder %s921_s1, %s661_s27  ;;  %p665_p1 = scmp.lt.u32.totalorder %s661_s27, %s921_s1 }
   0x8   :  { %p667_p2 = pnand %p665_p1, %p662_p0 }
   0xa   :  { %670 = shalt.err (!%p667_p2)
}
   0xb   :  { %s671_s8 = scalar_lea.vmem %s33_s22, 2048  ;;  %p676_p4 = scmp.lt.s32.totalorder %s33_s22, %s33_s22 }
   0xc   :  { %p672_p3 = scmp.ne.s32.totalorder %s33_s22, %s671_s8  ;;  %p677_p5 = scmp.lt.s32.totalorder %s671_s8, %s671_s8 }
   0xe   :  { %p678_p6 = por %p677_p5, %p676_p4 }
  0x10   :  { %p679_p7 = pnand %p678_p6, %p672_p3 }
  0x12   :  { %682 = shalt.err (!%p679_p7)
}
  0x13   :  { %s781_s9 = smov 128   ;;  %s782_s10 = smov 8  }
  0x14   :  { %38 = dma.hbm_to_vmem [thread:$0]  %s921_s1, 2048, %s33_s22, [#allocation6], %s781_s9, %s781_s9, %s782_s10  }
  0x15   :  { %s683_s15 = scalar_lea.hbm %s920_s0, 256 }
  0x16   :  { %p684_p8 = scmp.ne.s32.totalorder %s920_s0, %s683_s15  ;;  %p687_p9 = scmp.lt.u32.totalorder %s683_s15, %s920_s0 }
  0x18   :  { %p689_p10 = pnand %p687_p9, %p684_p8 }
  0x1a   :  { %692 = shalt.err (!%p689_p10)
}
  0x1b   :  { %s693_s20 = scalar_lea.vmem %s821_s24, 256  ;;  %p698_p12 = scmp.lt.s32.totalorder %s821_s24, %s821_s24 }
  0x1c   :  { %p694_p11 = scmp.ne.s32.totalorder %s821_s24, %s693_s20  ;;  %p699_p13 = scmp.lt.s32.totalorder %s693_s20, %s693_s20 }
  0x1e   :  { %p700_p0 = por %p699_p13, %p698_p12 }
  0x20   :  { %p701_p1 = pnand %p700_p0, %p694_p11 }
  0x22   :  { %704 = shalt.err (!%p701_p1)
}
  0x23   :  { %26 = dma.hbm_to_vmem [thread:$0]  %s920_s0, 256, %s821_s24, [#allocation3], %s781_s9, %s781_s9, %s782_s10  }
  0x24   :  { %s783_s22 = smov [#allocation7]   ;;  %s784_s25 = smov [#allocation8]  }
  0x25   :  { %s46_s23 = sshll.u32 %s783_s22, 4  ;;  %s60_s26 = sshll.u32 %s784_s25, 4  ;;  %s47_s23 = int_to_ptr.vmem [resolvable:$true] %s46_s23  ;;  %s858_s26 = int_to_ptr.vmem [resolvable:$true] %s60_s26 }
  0x26   :  { %s705_s29 = scalar_lea.hbm %s923_s3, 2048 }
  0x27   :  { %p706_p2 = scmp.ne.s32.totalorder %s923_s3, %s705_s29  ;;  %p709_p3 = scmp.lt.u32.totalorder %s705_s29, %s923_s3 }
  0x29   :  { %p711_p4 = pnand %p709_p3, %p706_p2 }
  0x2b   :  { %714 = shalt.err (!%p711_p4)
}
  0x2c   :  { %s715_s0 = scalar_lea.vmem %s47_s23, 2048  ;;  %p720_p6 = scmp.lt.s32.totalorder %s47_s23, %s47_s23 }
  0x2d   :  { %p716_p5 = scmp.ne.s32.totalorder %s47_s23, %s715_s0  ;;  %p721_p7 = scmp.lt.s32.totalorder %s715_s0, %s715_s0 }
  0x2f   :  { %p722_p8 = por %p721_p7, %p720_p6 }
  0x31   :  { %p723_p9 = pnand %p722_p8, %p716_p5 }
  0x33   :  { %726 = shalt.err (!%p723_p9)
}
  0x34   :  { %52 = dma.hbm_to_vmem [thread:$0]  %s923_s3, 2048, %s47_s23, [#allocation6], %s781_s9, %s781_s9, %s782_s10  }
  0x35   :  { %s727_s15 = scalar_lea.hbm %s925_s5, 2048 }
  0x36   :  { %p728_p10 = scmp.ne.s32.totalorder %s925_s5, %s727_s15  ;;  %p731_p11 = scmp.lt.u32.totalorder %s727_s15, %s925_s5 }
  0x38   :  { %p733_p12 = pnand %p731_p11, %p728_p10 }
  0x3a   :  { %736 = shalt.err (!%p733_p12)
}
  0x3b   :  { %s737_s20 = scalar_lea.vmem %s858_s26, 2048  ;;  %p742_p0 = scmp.lt.s32.totalorder %s858_s26, %s858_s26 }
  0x3c   :  { %p738_p13 = scmp.ne.s32.totalorder %s858_s26, %s737_s20  ;;  %p743_p1 = scmp.lt.s32.totalorder %s737_s20, %s737_s20 }
  0x3e   :  { %p744_p2 = por %p743_p1, %p742_p0 }
  0x40   :  { %p745_p3 = pnand %p744_p2, %p738_p13 }
  0x42   :  { %748 = shalt.err (!%p745_p3)
}
  0x43   :  { %66 = dma.hbm_to_vmem [thread:$0]  %s925_s5, 2048, %s858_s26, [#allocation9], %s781_s9, %s781_s9, %s782_s10  }
  0x44   :  { %771 = dma.done.wait [#allocation3], 256  }
  0x45   :  { %772 = vsyncadd [#allocation3], 4294967040 }
  0x46   :  { %773 = dma.done.wait [#allocation6], 4096  }
  0x47   :  { %774 = vsyncadd [#allocation6], 4294963200 }
  0x48   :  { %775 = dma.done.wait [#allocation9], 2048  }
  0x49   :  { %776 = vsyncadd [#allocation9], 4294965248  ;;  %v83_v0 = vld [vmem:[#allocation5] sm:$0xff]  ;;  %v84_v1 = vld [vmem:[#allocation5 + $0x8] sm:$0xff]  ;;  %s785_s23 = smov [#allocation10]  }
  0x4a   :  { %v85_v2 = vld [vmem:[#allocation5 + $0x10] sm:$0xff]  ;;  %v554_v3 = vpack.c.bf16 %v84_v1, %v83_v0  ;;  %v86_v4 = vld [vmem:[#allocation5 + $0x18] sm:$0xff]  ;;  %v87_v6 = vld [vmem:[#allocation5 + $0x20] sm:$0xff]  ;;  %s379_s25 = sshll.u32 %s785_s23, 4  ;;  %s380_s25 = int_to_ptr.vmem [resolvable:$true] %s379_s25 }
  0x4b   :  { %v558_v5 = vpack.c.bf16 %v86_v4, %v85_v2  ;;  %v88_v7 = vld [vmem:[#allocation5 + $0x28] sm:$0xff]  ;;  %v89_v9 = vld [vmem:[#allocation5 + $0x30] sm:$0xff]  ;;  %v90_v10 = vld [vmem:[#allocation5 + $0x38] sm:$0xff]  ;;  %s749_s26 = scalar_lea.vmem %s380_s25, 256  ;;  %p754_p5 = scmp.lt.s32.totalorder %s380_s25, %s380_s25 }
  0x4c   :  { %555 = vmatprep.subr.bf16.mxu0 %v554_v3  ;;  %v562_v8 = vpack.c.bf16 %v88_v7, %v87_v6  ;;  %v895_v11 = vld [vmem:[#allocation2] sm:$0xff]  ;;  %v183_v13 = vld [vmem:[#allocation7] sm:$0xff]  ;;  %v184_v14 = vld [vmem:[#allocation7 + $0x8] sm:$0xff]  ;;  %v566_v21 = vpack.c.bf16 %v90_v10, %v89_v9  ;;  %p750_p4 = scmp.ne.s32.totalorder %s380_s25, %s749_s26  ;;  %p755_p6 = scmp.lt.s32.totalorder %s749_s26, %s749_s26 }
  0x4d   :  { %557 = vmatpush3.bf16.msra.mxu0 %v554_v3  ;;  %v81_v12 = vmax.f32 %v895_v11, 0.0  ;;  %v185_v15 = vld [vmem:[#allocation7 + $0x10] sm:$0xff]  ;;  %v586_v16 = vpack.c.bf16 %v184_v14, %v183_v13  ;;  %v186_v17 = vld [vmem:[#allocation7 + $0x18] sm:$0xff]  ;;  %v187_v19 = vld [vmem:[#allocation7 + $0x20] sm:$0xff] }
  0x4e   :  { %559 = vmatprep.subr.bf16.mxu0 %v558_v5  ;;  %v590_v18 = vpack.c.bf16 %v186_v17, %v185_v15  ;;  %v188_v20 = vld [vmem:[#allocation7 + $0x28] sm:$0xff]  ;;  %v91_v22 = vld [vmem:[#allocation5 + $0x40] sm:$0xff]  ;;  %v189_v25 = vld [vmem:[#allocation7 + $0x30] sm:$0xff]  ;;  %p756_p7 = por %p755_p6, %p754_p5 }
  0x4f   :  { %481 = vmatprep.mubr.f32.mxu0 %v81_v12  ;;  %587 = vmatprep.subr.bf16.mxu1 %v586_v16  ;;  %v92_v23 = vld [vmem:[#allocation5 + $0x48] sm:$0xff]  ;;  %v594_v24 = vpack.c.bf16 %v188_v20, %v187_v19  ;;  %v190_v26 = vld [vmem:[#allocation7 + $0x38] sm:$0xff]  ;;  %v93_v28 = vld [vmem:[#allocation5 + $0x50] sm:$0xff] }
  0x50   :  { %589 = vmatpush3.bf16.msra.mxu1 %v586_v16  ;;  %v570_v27 = vpack.c.bf16 %v92_v23, %v91_v22  ;;  %v94_v29 = vld [vmem:[#allocation5 + $0x58] sm:$0xff]  ;;  %v598_v30 = vpack.c.bf16 %v190_v26, %v189_v25  ;;  %v191_v31 = vld [vmem:[#allocation7 + $0x40] sm:$0xff]  ;;  %v192_v32 = vld [vmem:[#allocation7 + $0x48] sm:$0xff]  ;;  %p757_p8 = pnand %p756_p7, %p750_p4 }
  0x51   :  { %561 = vmatpush3.bf16.msra.mxu0 %v558_v5  ;;  %591 = vmatprep.subr.bf16.mxu1 %v590_v18  ;;  %v574_v33 = vpack.c.bf16 %v94_v29, %v93_v28  ;;  %v95_v34 = vld [vmem:[#allocation5 + $0x60] sm:$0xff]  ;;  %v96_v35 = vld [vmem:[#allocation5 + $0x68] sm:$0xff]  ;;  %v602_v36 = vpack.c.bf16 %v192_v32, %v191_v31  ;;  %v193_v37 = vld [vmem:[#allocation7 + $0x50] sm:$0xff] }
  0x52   :  { %563 = vmatprep.subr.bf16.mxu0 %v562_v8  ;;  %v194_v38 = vld [vmem:[#allocation7 + $0x58] sm:$0xff]  ;;  %v578_v39 = vpack.c.bf16 %v96_v35, %v95_v34  ;;  %v97_v40 = vld [vmem:[#allocation5 + $0x70] sm:$0xff]  ;;  %v195_v43 = vld [vmem:[#allocation7 + $0x60] sm:$0xff] }
  0x53   :  { %v98_v41 = vld [vmem:[#allocation5 + $0x78] sm:$0xff]  ;;  %v606_v42 = vpack.c.bf16 %v194_v38, %v193_v37  ;;  %v196_v44 = vld [vmem:[#allocation7 + $0x68] sm:$0xff]  ;;  %v197_v49 = vld [vmem:[#allocation7 + $0x70] sm:$0xff] }
  0x54   :  { %593 = vmatpush3.bf16.msra.mxu1 %v590_v18  ;;  %v582_v45 = vpack.c.bf16 %v98_v41, %v97_v40  ;;  %v610_v46 = vpack.c.bf16 %v196_v44, %v195_v43  ;;  %v80_v47 = vld [vmem:[#allocation2 + $0x8] sm:$0xff]  ;;  %v281_v52 = vld [vmem:[#allocation8] sm:$0xff]  ;;  %v282_v53 = vld [vmem:[#allocation8 + $0x8] sm:$0xff] }
  0x55   :  { %565 = vmatpush3.bf16.msra.mxu0 %v562_v8  ;;  %595 = vmatprep.subr.bf16.mxu1 %v594_v24  ;;  %v82_v48 = vmax.f32 %v80_v47, 0.0  ;;  %v198_v50 = vld [vmem:[#allocation7 + $0x78] sm:$0xff]  ;;  %v618_v54 = vpack.c.bf16 %v282_v53, %v281_v52  ;;  %v393_v55 = vld [vmem:[%s922_s2] ss:$0 sm:$0xff]  ;;  %v285_v1 = vld [vmem:[#allocation8 + $0x20] sm:$0xff] }
  0x56   :  { %567 = vmatprep.subr.bf16.mxu0 %v566_v21  ;;  %v614_v51 = vpack.c.bf16 %v198_v50, %v197_v49  ;;  %v283_v60 = vld [vmem:[#allocation8 + $0x10] sm:$0xff]  ;;  %v284_v61 = vld [vmem:[#allocation8 + $0x18] sm:$0xff]  ;;  %v286_v2 = vld [vmem:[#allocation8 + $0x28] sm:$0xff] }
  0x57   :  { %v622_v0 = vpack.c.bf16 %v284_v61, %v283_v60  ;;  %v626_v3 = vpack.c.bf16 %v286_v2, %v285_v1  ;;  %v287_v4 = vld [vmem:[#allocation8 + $0x30] sm:$0xff]  ;;  %v288_v5 = vld [vmem:[#allocation8 + $0x38] sm:$0xff]  ;;  %v289_v7 = vld [vmem:[#allocation8 + $0x40] sm:$0xff] }
  0x58   :  { %597 = vmatpush3.bf16.msra.mxu1 %v594_v24  ;;  %v630_v6 = vpack.c.bf16 %v288_v5, %v287_v4  ;;  %v290_v8 = vld [vmem:[#allocation8 + $0x48] sm:$0xff]  ;;  %v291_v10 = vld [vmem:[#allocation8 + $0x50] sm:$0xff]  ;;  %v292_v12 = vld [vmem:[#allocation8 + $0x58] sm:$0xff] }
  0x59   :  { %569 = vmatpush3.bf16.msra.mxu0 %v566_v21  ;;  %599 = vmatprep.subr.bf16.mxu1 %v598_v30  ;;  %v634_v9 = vpack.c.bf16 %v290_v8, %v289_v7  ;;  %v638_v13 = vpack.c.bf16 %v292_v12, %v291_v10  ;;  %v293_v14 = vld [vmem:[#allocation8 + $0x60] sm:$0xff]  ;;  %v294_v15 = vld [vmem:[#allocation8 + $0x68] sm:$0xff]  ;;  %v295_v16 = vld [vmem:[#allocation8 + $0x70] sm:$0xff] }
  0x5a   :  { %571 = vmatprep.subr.bf16.mxu0 %v570_v27  ;;  %v296_v17 = vld [vmem:[#allocation8 + $0x78] sm:$0xff]  ;;  %v394_v19 = vld [vmem:[%s924_s4] ss:$0 sm:$0xff] }
  0x5b   :  { %v646_v18 = vpack.c.bf16 %v296_v17, %v295_v16 }
  0x5c   :  { %601 = vmatpush3.bf16.msra.mxu1 %v598_v30 }
  0x5d   :  { %573 = vmatpush3.bf16.msra.mxu0 %v570_v27  ;;  %603 = vmatprep.subr.bf16.mxu1 %v602_v36 }
  0x5e   :  { %575 = vmatprep.subr.bf16.mxu0 %v574_v33 }
  0x60   :  { %605 = vmatpush3.bf16.msra.mxu1 %v602_v36 }
  0x61   :  { %577 = vmatpush3.bf16.msra.mxu0 %v574_v33  ;;  %607 = vmatprep.subr.bf16.mxu1 %v606_v42 }
  0x62   :  { %579 = vmatprep.subr.bf16.mxu0 %v578_v39 }
  0x64   :  { %609 = vmatpush3.bf16.msra.mxu1 %v606_v42 }
  0x65   :  { %581 = vmatpush3.bf16.msra.mxu0 %v578_v39  ;;  %611 = vmatprep.subr.bf16.mxu1 %v610_v46 }
  0x66   :  { %583 = vmatprep.subr.bf16.mxu0 %v582_v45 }
  0x68   :  { %613 = vmatpush3.bf16.msra.mxu1 %v610_v46 }
  0x69   :  { %585 = vmatpush3.bf16.msra.mxu0 %v582_v45  ;;  %615 = vmatprep.subr.bf16.mxu1 %v614_v51 }
  0x6c   :  { %482 = vmatmul.mubr.f32.vlgmr.msra.gmra.mrb[0].mxu0 %v82_v48  ;;  %617 = vmatpush3.bf16.msra.mxu1 %v614_v51 }
  0x6d   :  { %619 = vmatprep.subr.bf16.mxu1 %v618_v54 }
 0x13f   :  { %v483_v56 = vpop.f32.mrb[0].mxu0 }
 0x140   :  { %v178_v57 = vadd.f32 %v483_v56, %v393_v55  ;;  %v172_v58 = vpop.f32.mrb[1].mxu0 }
 0x141   :  { %v173_v59 = vadd.f32 %v393_v55, %v172_v58 }
 0x142   :  { %v182_v63 = vmax.f32 %v178_v57, 0.0 }
 0x143   :  { %v181_v62 = vmax.f32 %v173_v59, 0.0 }
 0x145   :  { %516 = vmatprep.mubr.f32.mxu1 %v181_v62 }
 0x146   :  { %517 = vmatmul.mubr.f32.vlgmr.msra.gmra.mrb[0].mxu1 %v182_v63 }
 0x147   :  { %621 = vmatpush3.bf16.msra.mxu1 %v618_v54  ;;  %551 = vmatprep.mubr.f32.mxu1 %v895_v11  ;;  %v642_v11 = vpack.c.bf16 %v294_v15, %v293_v14 }
 0x148   :  { %623 = vmatprep.subr.bf16.mxu1 %v622_v0 }
 0x14b   :  { %625 = vmatpush3.bf16.msra.mxu1 %v622_v0 }
 0x14c   :  { %627 = vmatprep.subr.bf16.mxu1 %v626_v3 }
 0x14f   :  { %629 = vmatpush3.bf16.msra.mxu1 %v626_v3 }
 0x150   :  { %631 = vmatprep.subr.bf16.mxu1 %v630_v6 }
 0x153   :  { %633 = vmatpush3.bf16.msra.mxu1 %v630_v6 }
 0x154   :  { %635 = vmatprep.subr.bf16.mxu1 %v634_v9 }
 0x157   :  { %637 = vmatpush3.bf16.msra.mxu1 %v634_v9 }
 0x158   :  { %639 = vmatprep.subr.bf16.mxu1 %v638_v13 }
 0x15b   :  { %641 = vmatpush3.bf16.msra.mxu1 %v638_v13 }
 0x15c   :  { %643 = vmatprep.subr.bf16.mxu1 %v642_v11 }
 0x15f   :  { %645 = vmatpush3.bf16.msra.mxu1 %v642_v11 }
 0x160   :  { %647 = vmatprep.subr.bf16.mxu1 %v646_v18 }
 0x163   :  { %649 = vmatpush3.bf16.msra.mxu1 %v646_v18 }
 0x166   :  { %552 = vmatmul.mubr.f32.vlgmr.msra.gmra.mrb[0].mxu1 %v80_v47 }
 0x239   :  { %v553_v20 = vpop.f32.mrb[0].mxu1 }
 0x23a   :  { %v650_v21 = vadd.f32 %v553_v20, %v394_v19  ;;  %v363_v22 = vpop.f32.mrb[1].mxu1 }
 0x23b   :  { %v651_v23 = vadd.f32 %v394_v19, %v363_v22 }
 0x23c   :  { %373 = vst [vmem:[#allocation10 + $0x8] sm:$0xff] %v650_v21 }
 0x23d   :  { %372 = vst [vmem:[#allocation10] sm:$0xff] %v651_v23 }
 0x23e   :  { %760 = shalt.err (!%p757_p8)
}
 0x23f   :  { %s761_s4 = scalar_lea.hbm %s926_s6, 256 }
 0x240   :  { %p762_p9 = scmp.ne.s32.totalorder %s926_s6, %s761_s4  ;;  %p765_p10 = scmp.lt.u32.totalorder %s761_s4, %s926_s6 }
 0x242   :  { %p767_p11 = pnand %p765_p10, %p762_p9 }
 0x244   :  { %770 = shalt.err (!%p767_p11)
}
 0x245   :  { %385 = dma.vmem_to_hbm [thread:$0]  %s380_s25, 256, %s926_s6, [#allocation4], %s781_s9, %s781_s9, %s782_s10  }
 0x246   :  { %777 = dma.done.wait [#allocation4], 256  }
 0x247   :  { %778 = vsyncadd [#allocation4], 4294967040 }
 0x248   :  { %389 = vsyncpa [#allocation3], 1 }
 0x249   :  { %390 = vsyncpa [#allocation6], 1 }
 0x24a   :  { %391 = vsyncpa [#allocation9], 1 }
 0x24b   :  { %392 = vsyncpa [#allocation4], 1 }

</bundles_post_ra>
